<compile_context>
chip_gen: v6e
topology: v6e:2x2x1
jax: 0.10.0
libtpu: 0.0.40
codegen_flags: <defaults>
</compile_context>

<pallas_src>
import jax
import jax.numpy as jnp
from jax.experimental import pallas as pl
from jax.experimental.pallas import tpu as pltpu


# ---------------------------------------------------------------------------
# Tiling configuration
# ---------------------------------------------------------------------------
_TARGET_TILE_BYTES = 4 << 20   # ~4 MiB per tile (in or out, whichever is wider)
_TILE_COLS = 2048              # lane-dim target (multiple of 128)
_VMEM_LIMIT_BYTES = 32 << 20   # 4 buffers x 4 MiB = 16 MiB << 32 MiB; safe on
                               # v5e/v6e (128 MiB physical) and v7x (64 MiB).


def _sublane_align(dtype) -> int:
    """Native packed-sublane count: 8 for 4-byte, 16 for 2-byte, 32 for 1-byte."""
    return max(8, 32 // jnp.dtype(dtype).itemsize)


def _pick_tile(dim: int, target: int, align: int) -> int:
    """Largest legal tile <= max(target, align) for a dimension of size `dim`.

    A block dim must be a multiple of `align` OR equal the full array dim.
    The array does NOT have to be divisible by the block: the pl.cdiv grid plus
    padded edge blocks handle the remainder, so an unaligned large `dim` never
    forces a full-dimension (VMEM-blowing) block.
    """
    if dim <= target:
        return dim                              # full-dim block is always legal
    return max(align, (target // align) * align)


def _as_lane_dense_2d(y, max_cols: int = _TILE_COLS):
    """Metadata-only reshape to a lane-dense 2-D layout.

    Picks the largest multiple-of-128 column count <= max_cols that divides
    y.size, so the kernel gets unmasked full-width vector loads/stores.
    """
    total = y.size
    cols = 0
    c = 128
    while c <= min(max_cols, total):
        if total % c == 0:
            cols = c
        c += 128
    if cols == 0:
        # No 128-multiple factorization: fall back to (leading, last) layout.
        if y.ndim >= 2:
            return y.reshape(-1, y.shape[-1])
        return y.reshape(1, -1)
    return y.reshape(total // cols, cols)


def _lambda_pallas_2d(y2d, in_kernel_fn, out_dtype):
    """Tiled, lane-dense Pallas streaming pass applying an elementwise func."""
    R, C = y2d.shape
    in_itemsize = jnp.dtype(y2d.dtype).itemsize
    out_itemsize = jnp.dtype(out_dtype).itemsize
    itemsize = max(in_itemsize, out_itemsize)

    # Lane tile first (align 128), then derive the row tile from a byte budget
    # so skinny layouts (cols=128) still get multi-MiB tiles instead of 128 KiB.
    tc = _pick_tile(C, _TILE_COLS, 128)
    row_align = _sublane_align(y2d.dtype)
    rows_budget = max(row_align, _TARGET_TILE_BYTES // max(1, tc * itemsize))
    tr = _pick_tile(R, rows_budget, row_align)

    grid = (pl.cdiv(R, tr), pl.cdiv(C, tc))

    def kernel(x_ref, o_ref):
        o_ref[...] = in_kernel_fn(x_ref[...]).astype(o_ref.dtype)

    return pl.pallas_call(
        kernel,
        out_shape=jax.ShapeDtypeStruct((R, C), out_dtype),
        grid_spec=pltpu.PrefetchScalarGridSpec(
            num_scalar_prefetch=0,
            grid=grid,
            in_specs=[pl.BlockSpec((tr, tc), lambda i, j: (i, j))],
            out_specs=pl.BlockSpec((tr, tc), lambda i, j: (i, j)),
        ),
        compiler_params=pltpu.CompilerParams(
            dimension_semantics=("parallel", "parallel"),
            vmem_limit_bytes=_VMEM_LIMIT_BYTES,
        ),
        cost_estimate=pl.CostEstimate(
            flops=R * C,
            transcendentals=0,
            bytes_accessed=R * C * (in_itemsize + out_itemsize),
        ),
    )(y2d)


class PallasLambda:
    """Pallas equivalent of the PyTorch `Lambda` module.

    func : a JAX-traceable function of a single array.
    elementwise :
        True  -> apply the func per-tile inside the Pallas kernel.
        False -> apply the func with plain XLA in the wrapper (always safe).
        None  -> default: shape-preserving funcs are assumed elementwise and
                 run in-kernel.  NOTE: shape-preserving but NON-elementwise
                 funcs (square transpose, per-axis softmax, ...) would be
                 silently wrong under per-tile application; pass
                 elementwise=False for those.  The in-kernel func sees the
                 flattened 2-D tile shape, not the original shape.

    Shape-changing funcs (e.g. the tutorial's flatten/.view) are applied in the
    wrapper: a reshape is metadata-only, so no kernel (and no extra HBM
    read+write) is launched for them.
    """

    def __init__(self, func, elementwise=None):
        self.func = func
        self.elementwise = elementwise

    def __call__(self, x):
        out_aval = jax.eval_shape(self.func, x)

        if out_aval.shape != x.shape or self.elementwise is False:
            # Shape-changing (tutorial flatten) or declared non-elementwise:
            # let XLA handle it directly.  For the flatten case this is a
            # metadata-only reshape — zero HBM traffic, zero kernel time.
            return self.func(x)

        # Shape-preserving, (assumed) elementwise: stream through a Pallas
        # kernel, applying the func per lane-dense tile.
        y2d = _as_lane_dense_2d(x)
        o2d = _lambda_pallas_2d(y2d, self.func, out_aval.dtype)
        return o2d.reshape(out_aval.shape)


if __name__ == "__main__":
    key = jax.random.PRNGKey(0)

    # Small NCHW input, consistent with the tutorial's use of Lambda to flatten
    # a (N, C, H, W) activation: batch=2, channels=4, spatial=16x16.
    N, C, H, W = 2, 4, 16, 16
    x = jax.random.normal(key, (N, C, H, W), dtype=jnp.float32)

    # 1) The tutorial's lambda:  x.view(x.size(0), -1)
    #    Handled as a metadata-only reshape in the wrapper (no kernel launch).
    flatten = lambda t: t.reshape(t.shape[0], -1)
    lam = PallasLambda(flatten)
    out = jax.block_until_ready(lam(x))
    ref = flatten(x)
    assert out.shape == (N, C * H * W), out.shape
    assert out.dtype == jnp.float32
    assert bool(jnp.allclose(out, ref)), "flatten mismatch vs reference"

    # 2) Shape-preserving elementwise Lambda: func runs inside the Pallas kernel.
    relu_lam = PallasLambda(lambda t: jnp.maximum(t, 0.0), elementwise=True)
    out2 = jax.block_until_ready(relu_lam(x))
    assert out2.shape == x.shape
    assert bool(jnp.allclose(out2, jnp.maximum(x, 0.0))), "relu mismatch vs reference"

    print("KERNEL_OK")
</pallas_src>

<mosaic_0001>
module attributes {stable_mosaic.version = 11 : i64} {
  func.func @kernel(%arg0: i32, %arg1: i32, %arg2: memref<1x2048xf32, #tpu.memory_space<vmem>>, %arg3: memref<1x2048xf32, #tpu.memory_space<vmem>>) attributes {dimension_semantics = [#tpu.dimension_semantics<parallel>, #tpu.dimension_semantics<parallel>], iteration_bounds = array<i64: 1, 1>, scalar_prefetch = 0 : i64, scratch_operands = 0 : i64, tpu.core_type = #tpu.core_type<tc>, window_params = [{transform_indices = @transform_0, window_bounds = array<i64: 1, 2048>}, {transform_indices = @transform_1, window_bounds = array<i64: 1, 2048>}]} {
    %c0 = arith.constant 0 : index
    %c0_0 = arith.constant 0 : index
    %0 = vector.load %arg2[%c0, %c0_0] : memref<1x2048xf32, #tpu.memory_space<vmem>>, vector<1x2048xf32>
    %cst = arith.constant 0.000000e+00 : f32
    %1 = vector.broadcast %cst : f32 to vector<1x2048xf32>
    %2 = arith.maximumf %0, %1 : vector<1x2048xf32>
    %c0_1 = arith.constant 0 : index
    %c0_2 = arith.constant 0 : index
    %3 = vector.load %arg3[%c0_1, %c0_2] : memref<1x2048xf32, #tpu.memory_space<vmem>>, vector<1x2048xf32>
    tpu.vector_store %arg3[%c0_1, %c0_2], %2 {strides = array<i32>} : memref<1x2048xf32, #tpu.memory_space<vmem>>, vector<1x2048xf32>,
    return
  }
  func.func @transform_0(%arg0: i32, %arg1: i32) -> (i32, i32) {
    %c0_i32 = arith.constant 0 : i32
    return %arg0, %arg1 : i32, i32
  }
  func.func @transform_1(%arg0: i32, %arg1: i32) -> (i32, i32) {
    %c0_i32 = arith.constant 0 : i32
    return %arg0, %arg1 : i32, i32
  }
}

</mosaic_0001>

<bundles_post_ra>
// kernel: tpu_custom_call.1
= control target key start
LH: loop header
LB: loop body
LE: loop exit
PB: predicated region body
PF: predicated region fallthrough
CT: control target
= control target key end

     0   :  { %6 = vsyncpa [#allocation3], 0  ;;  %s106_s0 = inlined_call_operand.hbm [shape: f32[1,2048], index: 0, kind: input, shape index: {}]   ;;  %s107_s1 = inlined_call_operand.hbm [shape: f32[1,2048], index: 1, kind: output, shape index: {}]  }
   0x1   :  { %7 = vsyncpa [#allocation4], 0  ;;  %s88_s6 = smov [#allocation2]  }
   0x2   :  { %s14_s7 = sshll.u32 %s88_s6, 4  ;;  %s15_s7 = int_to_ptr.vmem [resolvable:$true] %s14_s7 }
   0x3   :  { %s52_s8 = scalar_lea.vmem %s15_s7, 256  ;;  %p57_p1 = scmp.lt.s32.totalorder %s15_s7, %s15_s7 }
   0x4   :  { %p53_p0 = scmp.ne.s32.totalorder %s15_s7, %s52_s8  ;;  %p58_p2 = scmp.lt.s32.totalorder %s52_s8, %s52_s8 }
   0x6   :  { %p59_p3 = por %p58_p2, %p57_p1 }
   0x8   :  { %p60_p4 = pnand %p59_p3, %p53_p0 }
   0xa   :  { %63 = shalt.err (!%p60_p4)
}
   0xb   :  { %17 = dma.hbm_to_vmem [thread:$0]  %s106_s0, 256, %s15_s7, [#allocation3]  }
   0xc   :  { %84 = dma.done.wait [#allocation3], 256  }
   0xd   :  { %85 = vsyncadd [#allocation3], 4294967040  ;;  %s89_s11 = smov [#allocation5]   ;;  %v21_v0 = vld [vmem:[#allocation2] sm:$0xff]  ;;  %v22_v1 = vld [vmem:[#allocation2 + $0x8] sm:$0xff] }
   0xe   :  { %s33_s12 = sshll.u32 %s89_s11, 4  ;;  %v23_v2 = vmax.f32 %v21_v0, 0.0  ;;  %v24_v3 = vmax.f32 %v22_v1, 0.0  ;;  %s34_s12 = int_to_ptr.vmem [resolvable:$true] %s33_s12 }
   0xf   :  { %s64_s13 = scalar_lea.vmem %s34_s12, 256  ;;  %p69_p6 = scmp.lt.s32.totalorder %s34_s12, %s34_s12 }
  0x10   :  { %25 = vst [vmem:[#allocation5] sm:$0xff] %v23_v2  ;;  %26 = vst [vmem:[#allocation5 + $0x8] sm:$0xff] %v24_v3  ;;  %p65_p5 = scmp.ne.s32.totalorder %s34_s12, %s64_s13  ;;  %p70_p7 = scmp.lt.s32.totalorder %s64_s13, %s64_s13 }
  0x12   :  { %p71_p8 = por %p70_p7, %p69_p6 }
  0x14   :  { %p72_p9 = pnand %p71_p8, %p65_p5 }
  0x16   :  { %75 = shalt.err (!%p72_p9)
}
  0x17   :  { %36 = dma.vmem_to_hbm [thread:$0]  %s34_s12, 256, %s107_s1, [#allocation4]  }
  0x18   :  { %86 = dma.done.wait [#allocation4], 256  }
  0x19   :  { %87 = vsyncadd [#allocation4], 4294967040 }
  0x1a   :  { %40 = vsyncpa [#allocation3], 1 }
  0x1b   :  { %41 = vsyncpa [#allocation4], 1 }

</bundles_post_ra>
